<compile_context>
chip_gen: v7x
topology: tpu7x:2x2x1
jax: 0.10.0
libtpu: 0.0.40
codegen_flags: <defaults>
</compile_context>

<pallas_src>
import functools

import numpy as np
import jax
import jax.numpy as jnp
from jax.experimental import pallas as pl
from jax.experimental.pallas import tpu as pltpu


def _round_up(x, m):
    return ((x + m - 1) // m) * m


def _ordinal_loss_kernel(prob_ref, depth_ref, out_sum_ref, out_cnt_ref, *,
                         ord_num, k_pad, beta, discretization):
    s = pl.program_id(1)

    @pl.when(s == 0)
    def _init():
        out_sum_ref[...] = jnp.zeros_like(out_sum_ref)
        out_cnt_ref[...] = jnp.zeros_like(out_cnt_ref)

    prob = prob_ref[0].astype(jnp.float32)     # (K_pad, TS)
    depth = depth_ref[0].astype(jnp.float32)   # (1, TS)

    valid = depth > 0.0                        # (1, TS)
    vf = valid.astype(jnp.float32)
    # Invalid / padded pixels are excluded by the mask; safe depth avoids NaN.
    safe_depth = jnp.where(valid, depth, 1.0)

    if discretization == 'SID':
        label_f = (float(ord_num) / float(np.log(beta))) * jnp.log(safe_depth)
    else:
        label_f = float(ord_num) * (safe_depth - 1.0) / (float(beta) - 1.0)
    # torch .long() truncates toward zero; int32 cast matches.
    label_i = label_f.astype(jnp.int32)        # (1, TS)

    k = jax.lax.broadcasted_iota(jnp.int32, prob.shape, 0)   # (K_pad, TS)
    # Fused single-log form of ord_c1*logP + ord_c0*log(1-P).
    x = jnp.where(k < label_i, prob, 1.0 - prob)
    logx = jnp.log(jnp.maximum(x, 1e-8))       # one EUP log per element

    if k_pad != ord_num:
        # Zero out padded ordinal channels (only present when ord_num % 8 != 0).
        logx = jnp.where(k < ord_num, logx, 0.0)

    # Reduce the K dim in groups of 8 sublanes with static slices: vreg-wise
    # VPU adds, no per-step XLU cross-lane reduction.
    partial = logx[0:8, :]
    for g in range(1, k_pad // 8):
        partial = partial + logx[8 * g:8 * (g + 1), :]       # (8, TS)

    # Valid-pixel mask applied once on the (8, TS) partial (lane-wise).
    out_sum_ref[...] = out_sum_ref[...] + (partial * vf)[None]
    out_cnt_ref[...] = out_cnt_ref[...] + vf[None]


def ordinal_regression_loss(prob, depth, ord_num, beta, discretization='SID',
                            *, lane_tile=None):
    """Pallas implementation of OrdinalRegressionLoss.forward."""
    N, K, H, W = prob.shape
    assert K == ord_num, "channel dim must equal ord_num"
    assert depth.shape == (N, H, W)
    S = H * W

    k_pad = _round_up(K, 8)
    itemsize = prob.dtype.itemsize
    if lane_tile is None:
        # Keep the prob tile around ~4 MiB so 2x double-buffering stays well
        # inside the default scoped VMEM on every generation (incl. v7x 64 MiB).
        target_bytes = 4 * 1024 * 1024
        lane_tile = max(128, (target_bytes // (k_pad * itemsize)) // 128 * 128)
    ts = min(int(lane_tile), _round_up(S, 128))
    s_pad = _round_up(S, ts)
    gs = s_pad // ts

    prob3 = prob.reshape(N, K, S)
    depth3 = depth.reshape(N, 1, S)
    if k_pad != K or s_pad != S:
        # Lane-dense padding; padded depth = 0 -> masked out by the valid mask.
        prob3 = jnp.pad(prob3, ((0, 0), (0, k_pad - K), (0, s_pad - S)),
                        constant_values=1.0)
        depth3 = jnp.pad(depth3, ((0, 0), (0, 0), (0, s_pad - S)),
                         constant_values=0.0)

    kernel = functools.partial(
        _ordinal_loss_kernel,
        ord_num=ord_num, k_pad=k_pad, beta=beta, discretization=discretization)

    cost = pl.CostEstimate(
        flops=5 * N * k_pad * s_pad,
        transcendentals=N * k_pad * s_pad + N * s_pad,
        bytes_accessed=int(N * k_pad * s_pad * itemsize
                           + N * s_pad * depth3.dtype.itemsize
                           + N * 9 * ts * 4))

    out_sum, out_cnt = pl.pallas_call(
        kernel,
        out_shape=(jax.ShapeDtypeStruct((N, 8, ts), jnp.float32),
                   jax.ShapeDtypeStruct((N, 1, ts), jnp.float32)),
        grid_spec=pltpu.PrefetchScalarGridSpec(
            num_scalar_prefetch=0,
            grid=(N, gs),
            in_specs=[
                pl.BlockSpec((1, k_pad, ts), lambda n, s: (n, 0, s)),
                pl.BlockSpec((1, 1, ts), lambda n, s: (n, 0, s)),
            ],
            out_specs=[
                pl.BlockSpec((1, 8, ts), lambda n, s: (n, 0, 0)),
                pl.BlockSpec((1, 1, ts), lambda n, s: (n, 0, 0)),
            ],
        ),
        compiler_params=pltpu.CompilerParams(
            dimension_semantics=("parallel", "arbitrary")),
        cost_estimate=cost,
    )(prob3, depth3)

    # Tiny final reduction + divide in plain JAX.  Matches the reference:
    # if there are no valid pixels the result is NaN (mean over empty set).
    return -jnp.sum(out_sum) / jnp.sum(out_cnt)


def ordinal_regression_loss_ref(prob, depth, ord_num, beta, discretization='SID'):
    """Pure-JAX reference mirroring the PyTorch semantics."""
    valid = depth > 0.0
    safe_depth = jnp.where(valid, depth, 1.0)
    if discretization == 'SID':
        label = ord_num * jnp.log(safe_depth) / np.log(beta)
    else:
        label = ord_num * (safe_depth - 1.0) / (beta - 1.0)
    label = label.astype(jnp.int32)[:, None, :, :]
    k = jnp.arange(ord_num, dtype=jnp.int32).reshape(1, ord_num, 1, 1)
    ord_c1 = (k < label).astype(jnp.float32)
    ord_c0 = 1.0 - ord_c1
    logP = jnp.log(jnp.maximum(prob, 1e-8))
    log1P = jnp.log(jnp.maximum(1.0 - prob, 1e-8))
    entropy = jnp.sum(ord_c1 * logP + ord_c0 * log1P, axis=1)
    vf = valid.astype(jnp.float32)
    return -jnp.sum(entropy * vf) / jnp.sum(vf)


if __name__ == "__main__":
    key = jax.random.PRNGKey(0)
    k1, k2, k3 = jax.random.split(key, 3)

    # Small shapes consistent with the module: prob (N, ord_num, H, W),
    # depth (N, H, W).
    N, ord_num, H, W = 2, 8, 16, 16
    beta = 80.0

    prob = jax.random.uniform(k1, (N, ord_num, H, W), jnp.float32,
                              minval=1e-4, maxval=1.0 - 1e-4)
    depth = jax.random.uniform(k2, (N, H, W), jnp.float32,
                               minval=0.5, maxval=beta)
    # Zero out ~20% of pixels so the valid-mask path is exercised.
    depth = jnp.where(jax.random.uniform(k3, (N, H, W)) < 0.2, 0.0, depth)

    ok = True
    for disc in ('SID', 'UD'):
        loss = ordinal_regression_loss(prob, depth, ord_num, beta, disc)
        loss = jax.block_until_ready(loss)
        ref = ordinal_regression_loss_ref(prob, depth, ord_num, beta, disc)
        ok = ok and bool(jnp.allclose(loss, ref, rtol=1e-5, atol=1e-5))
        assert ok, (disc, loss, ref)

    print("KERNEL_OK")
</pallas_src>

<mosaic_0001>
module attributes {stable_mosaic.version = 11 : i64} {
  func.func @_ordinal_loss_kernel(%arg0: i32, %arg1: i32, %arg2: memref<1x8x256xf32, #tpu.memory_space<vmem>>, %arg3: memref<1x1x256xf32, #tpu.memory_space<vmem>>, %arg4: memref<1x8x256xf32, #tpu.memory_space<vmem>>, %arg5: memref<1x1x256xf32, #tpu.memory_space<vmem>>) attributes {dimension_semantics = [#tpu.dimension_semantics<parallel>, #tpu.dimension_semantics<arbitrary>], iteration_bounds = array<i64: 2, 1>, scalar_prefetch = 0 : i64, scratch_operands = 0 : i64, tpu.core_type = #tpu.core_type<tc>, window_params = [{transform_indices = @transform_0, window_bounds = array<i64: 1, 8, 256>}, {transform_indices = @transform_1, window_bounds = array<i64: 1, 1, 256>}, {transform_indices = @transform_2, window_bounds = array<i64: 1, 8, 256>}, {transform_indices = @transform_3, window_bounds = array<i64: 1, 1, 256>}]} {
    %c0_i32 = arith.constant 0 : i32
    %0 = arith.cmpi eq, %arg1, %c0_i32 : i32
    %1 = arith.extui %0 : i1 to i32
    %c0_i32_0 = arith.constant 0 : i32
    %2 = arith.cmpi ne, %1, %c0_i32_0 : i32
    scf.if %2 {
      %cst_22 = arith.constant 0.000000e+00 : f32
      %36 = vector.broadcast %cst_22 : f32 to vector<1x8x256xf32>
      %c0_23 = arith.constant 0 : index
      %c0_24 = arith.constant 0 : index
      %c0_25 = arith.constant 0 : index
      %37 = vector.load %arg4[%c0_23, %c0_24, %c0_25] : memref<1x8x256xf32, #tpu.memory_space<vmem>>, vector<1x8x256xf32>
      tpu.vector_store %arg4[%c0_23, %c0_24, %c0_25], %36 {strides = array<i32>} : memref<1x8x256xf32, #tpu.memory_space<vmem>>, vector<1x8x256xf32>,
      %cst_26 = arith.constant 0.000000e+00 : f32
      %38 = vector.broadcast %cst_26 : f32 to vector<1x1x256xf32>
      %c0_27 = arith.constant 0 : index
      %c0_28 = arith.constant 0 : index
      %c0_29 = arith.constant 0 : index
      %39 = vector.load %arg5[%c0_27, %c0_28, %c0_29] : memref<1x1x256xf32, #tpu.memory_space<vmem>>, vector<1x1x256xf32>
      tpu.vector_store %arg5[%c0_27, %c0_28, %c0_29], %38 {strides = array<i32>} : memref<1x1x256xf32, #tpu.memory_space<vmem>>, vector<1x1x256xf32>,
    } else {
    }
    %c0 = arith.constant 0 : index
    %c0_1 = arith.constant 0 : index
    %c0_2 = arith.constant 0 : index
    %3 = vector.load %arg2[%c0, %c0_1, %c0_2] : memref<1x8x256xf32, #tpu.memory_space<vmem>>, vector<1x8x256xf32>
    %4 = vector.shape_cast %3 : vector<1x8x256xf32> to vector<8x256xf32>
    %c0_3 = arith.constant 0 : index
    %c0_4 = arith.constant 0 : index
    %c0_5 = arith.constant 0 : index
    %5 = vector.load %arg3[%c0_3, %c0_4, %c0_5] : memref<1x1x256xf32, #tpu.memory_space<vmem>>, vector<1x1x256xf32>
    %6 = vector.shape_cast %5 : vector<1x1x256xf32> to vector<1x256xf32>
    %cst = arith.constant 0.000000e+00 : f32
    %7 = vector.broadcast %cst : f32 to vector<1x256xf32>
    %8 = arith.cmpf ogt, %6, %7 : vector<1x256xf32>
    %9 = arith.extui %8 : vector<1x256xi1> to vector<1x256xi32>
    %10 = arith.sitofp %9 : vector<1x256xi32> to vector<1x256xf32>
    %cst_6 = arith.constant 1.000000e+00 : f32
    %11 = vector.broadcast %cst_6 : f32 to vector<1x256xf32>
    %12 = arith.select %8, %6, %11 : vector<1x256xi1>, vector<1x256xf32>
    %13 = math.log %12 : vector<1x256xf32>
    %cst_7 = arith.constant 1.82563925 : f32
    %14 = vector.broadcast %cst_7 : f32 to vector<1x256xf32>
    %15 = arith.mulf %14, %13 : vector<1x256xf32>
    %16 = arith.fptosi %15 : vector<1x256xf32> to vector<1x256xi32>
    %17 = tpu.iota {dimensions = array<i32: 0>} : vector<8x256xi32>
    %18 = vector.broadcast %16 : vector<1x256xi32> to vector<8x256xi32>
    %19 = arith.cmpi slt, %17, %18 : vector<8x256xi32>
    %cst_8 = arith.constant 1.000000e+00 : f32
    %20 = vector.broadcast %cst_8 : f32 to vector<8x256xf32>
    %21 = arith.subf %20, %4 : vector<8x256xf32>
    %22 = arith.select %19, %4, %21 : vector<8x256xi1>, vector<8x256xf32>
    %cst_9 = arith.constant 9.99999993E-9 : f32
    %23 = vector.broadcast %cst_9 : f32 to vector<8x256xf32>
    %24 = arith.maximumf %22, %23 : vector<8x256xf32>
    %25 = math.log %24 : vector<8x256xf32>
    %c0_10 = arith.constant 0 : index
    %c0_11 = arith.constant 0 : index
    %c0_12 = arith.constant 0 : index
    %26 = vector.load %arg4[%c0_10, %c0_11, %c0_12] : memref<1x8x256xf32, #tpu.memory_space<vmem>>, vector<1x8x256xf32>
    %27 = vector.broadcast %10 : vector<1x256xf32> to vector<8x256xf32>
    %28 = arith.mulf %25, %27 : vector<8x256xf32>
    %29 = vector.shape_cast %28 : vector<8x256xf32> to vector<1x8x256xf32>
    %30 = arith.addf %26, %29 : vector<1x8x256xf32>
    %c0_13 = arith.constant 0 : index
    %c0_14 = arith.constant 0 : index
    %c0_15 = arith.constant 0 : index
    %31 = vector.load %arg4[%c0_13, %c0_14, %c0_15] : memref<1x8x256xf32, #tpu.memory_space<vmem>>, vector<1x8x256xf32>
    tpu.vector_store %arg4[%c0_13, %c0_14, %c0_15], %30 {strides = array<i32>} : memref<1x8x256xf32, #tpu.memory_space<vmem>>, vector<1x8x256xf32>,
    %c0_16 = arith.constant 0 : index
    %c0_17 = arith.constant 0 : index
    %c0_18 = arith.constant 0 : index
    %32 = vector.load %arg5[%c0_16, %c0_17, %c0_18] : memref<1x1x256xf32, #tpu.memory_space<vmem>>, vector<1x1x256xf32>
    %33 = vector.shape_cast %10 : vector<1x256xf32> to vector<1x1x256xf32>
    %34 = arith.addf %32, %33 : vector<1x1x256xf32>
    %c0_19 = arith.constant 0 : index
    %c0_20 = arith.constant 0 : index
    %c0_21 = arith.constant 0 : index
    %35 = vector.load %arg5[%c0_19, %c0_20, %c0_21] : memref<1x1x256xf32, #tpu.memory_space<vmem>>, vector<1x1x256xf32>
    tpu.vector_store %arg5[%c0_19, %c0_20, %c0_21], %34 {strides = array<i32>} : memref<1x1x256xf32, #tpu.memory_space<vmem>>, vector<1x1x256xf32>,
    return
  }
  func.func @transform_0(%arg0: i32, %arg1: i32) -> (i32, i32, i32) {
    %c0_i32 = arith.constant 0 : i32
    %c0_i32_0 = arith.constant 0 : i32
    return %arg0, %c0_i32, %arg1 : i32, i32, i32
  }
  func.func @transform_1(%arg0: i32, %arg1: i32) -> (i32, i32, i32) {
    %c0_i32 = arith.constant 0 : i32
    %c0_i32_0 = arith.constant 0 : i32
    return %arg0, %c0_i32, %arg1 : i32, i32, i32
  }
  func.func @transform_2(%arg0: i32, %arg1: i32) -> (i32, i32, i32) {
    %c0_i32 = arith.constant 0 : i32
    %c0_i32_0 = arith.constant 0 : i32
    %c0_i32_1 = arith.constant 0 : i32
    return %arg0, %c0_i32, %c0_i32_0 : i32, i32, i32
  }
  func.func @transform_3(%arg0: i32, %arg1: i32) -> (i32, i32, i32) {
    %c0_i32 = arith.constant 0 : i32
    %c0_i32_0 = arith.constant 0 : i32
    %c0_i32_1 = arith.constant 0 : i32
    return %arg0, %c0_i32, %c0_i32_0 : i32, i32, i32
  }
}

</mosaic_0001>

<bundles_post_ra>
// kernel: tpu_custom_call.1
= control target key start
LH: loop header
LB: loop body
LE: loop exit
PB: predicated region body
PF: predicated region fallthrough
CT: control target
= control target key end

     0   :  { %9 = vsyncpa [#allocation3], 0  ;;  %s1068_s0 = inlined_call_operand.hbm [shape: f32[2,8,256], index: 0, kind: input, shape index: {}]   ;;  %s1069_s1 = inlined_call_operand.hbm [shape: f32[2,1,256], index: 1, kind: input, shape index: {}]   ;;  %s1070_s2 = inlined_call_operand.hbm [shape: f32[2,8,256], index: 2, kind: output, shape index: {0}]   ;;  %s1071_s3 = inlined_call_operand.hbm [shape: f32[2,1,256], index: 3, kind: output, shape index: {1}]  }
   0x1   :  { %11 = vsyncpa [#allocation3 + $0x1], 0 }
   0x2   :  { %12 = vsyncpa [#allocation6], 0 }
   0x3   :  { %14 = vsyncpa [#allocation6 + $0x1], 0 }
   0x4   :  { %15 = vsyncpa [#allocation4], 0 }
   0x5   :  { %17 = vsyncpa [#allocation4 + $0x1], 0 }
   0x6   :  { %18 = vsyncpa [#allocation9], 0 }
   0x7   :  { %20 = vsyncpa [#allocation9 + $0x1], 0  ;;  %s815_s12 = smov 0   ;;  %s817_s13 = smov 0  }
   0x8   :  { %s819_s14 = smov 0   ;;  %s821_s15 = smov 0  }
   0x9   :  { %s823_s16 = smov 0   ;;  %s825_s17 = smov 0  }
   0xa LB: > { %s501_s18 = sadd.s32 4294967295, %s788_s17   ;;  %s502_s19 = sadd.s32 4294967294, %s788_s17   ;;  %s788_s17 = sphi %s825_s17, %s26_s17   ;;  %s784_s16 = sphi %s823_s16, %s1091_s16   ;;  %s780_s15 = sphi %s821_s15, %s1090_s15   ;;  %s776_s14 = sphi %s819_s14, %s1089_s14   ;;  %s772_s13 = sphi %s817_s13, %s1088_s13   ;;  %s768_s12 = sphi %s815_s12, %s1087_s12  }
   0xb   : > { %s38_s20 = sadd.s32 1, %s784_s16  ;;  %s47_s21 = sadd.s32 1, %s776_s14 }
   0xc   : > { %p40_p0 = scmp.ge.s32.totalorder %s38_s20, 2  ;;  %p54_p1 = scmp.ne.s32.totalorder %s776_s14, %s772_s13 }
   0xd   : > { %p55_p2 = scmp.eq.s32.totalorder %s788_s17, 0  ;;  %p60_p3 = scmp.ne.s32.totalorder %s772_s13, %s768_s12 }
   0xe   : > { %s1093_s20 = smov (%p40_p0, %s38_s20), 0  ;;  %p61_p5 = scmp.eq.s32.totalorder %s501_s18, 0 }
   0xf   : > { %p856_p4 = por %p55_p2, %p54_p1  ;;  %s42_s23 = ssub.s32 %s784_s16, %s1093_s20 }
  0x10   : > { %p112_p6 = scmp.eq.s32.totalorder %s501_s18, 1  ;;  %p45_p7 = scmp.eq.s32.totalorder %s42_s23, 0 }
  0x11   : > { %p862_p8 = por %p61_p5, %p60_p3  ;;  %p118_p10 = scmp.eq.s32.totalorder %s502_s19, 1 }
  0x12   : > { %p866_p9 = por %p112_p6, %p54_p1  ;;  %p553_p13 = scmp.lt.s32.totalorder %s788_s17, 2 }
  0x13   : > { %s1075_s24 = scalar_select %p862_p8, 1, 0 }
  0x14   : > { %s1076_s25 = scalar_select %p866_p9, 1, 0 }
  0x15   : > { %s871_s26 = scalar_select %p45_p7, %s776_s14, %s47_s21  }
  0x16   : > { %p873_p11 = por %p118_p10, %p60_p3  ;;  %s880_s28 = sand.u32 1, %s776_s14  }
  0x17   : > { %s505_s29 = sshll.u32 %s880_s28, 4  ;;  %s525_s30 = sshll.u32 %s784_s16, 8 }
  0x18   : > { %s1077_s27 = scalar_select %p873_p11, 1, 0 }
  0x19   : > { %s887_s6 = scalar_lea.hbm %s1068_s0, %s525_s30  ;;  %s168_s7 = scalar_lea.vmem [#allocation2], %s505_s29 }
  0x1a   : > { %s178_s8 = sshll.u32 %s168_s7, 4  ;;  %p893_p0 = pnand %p553_p13, %p856_p4  ;;  %s889_s8 = int_to_ptr.vmem [resolvable:$true] %s178_s8 }
  0x1b   : > { %s165_s10 = scalar_lea.sflag [#allocation3], %s880_s28  ;;  %s610_s11 = scalar_lea.hbm %s887_s6, 256 }
  0x1c   : > { %p611_p3 = scmp.ne.s32.totalorder %s887_s6, %s610_s11  ;;  %p612_p5 = pneg %p893_p0 }
  0x1d   : > { %s615_s21 = scalar_lea.hbm %s1068_s0, 512  ;;  %p616_p4 = scmp.lt.u32.totalorder %s887_s6, %s1068_s0 }
  0x1e   : > { %p613_p6 = pnand %p612_p5, %p611_p3  ;;  %p617_p10 = scmp.lt.u32.totalorder %s615_s21, %s610_s11 }
  0x1f   : > { %p619_p12 = scmp.lt.u32.totalorder %s610_s11, %s887_s6 }
  0x20   : > { %p614_p7 = pneg %p613_p6  ;;  %p618_p13 = por %p617_p10, %p616_p4 }
  0x22   : > { %p620_p1 = por %p619_p12, %p618_p13 }
  0x24   : > { %p621_p2 = pnand %p620_p1, %p614_p7 }
  0x26   : > { %624 = shalt.err (!%p621_p2)
}
  0x27   : > { %s625_s29 = scalar_lea.vmem %s889_s8, 256  ;;  %s790_s30 = smov [#allocation2]  }
  0x28   : > { %p626_p3 = scmp.ne.s32.totalorder %s889_s8, %s625_s29  ;;  %s630_s4 = sshll.u32 %s790_s30, 4  ;;  %s631_s4 = int_to_ptr.vmem [resolvable:$false] %s630_s4 }
  0x29   : > { %s632_s5 = scalar_lea.vmem %s631_s4, 512  ;;  %p633_p9 = scmp.lt.s32.totalorder %s889_s8, %s631_s4 }
  0x2a   : > { %p628_p6 = pnand %p626_p3, %p612_p5  ;;  %p634_p4 = scmp.lt.s32.totalorder %s632_s5, %s625_s29 }
  0x2c   : > { %p629_p11 = pneg %p628_p6  ;;  %p635_p10 = por %p634_p4, %p633_p9 }
  0x2e   : > { %p636_p12 = pnand %p635_p10, %p629_p11 }
  0x30   : > { %639 = shalt.err (!%p636_p12)
}
  0x31   : > { %542 = dma.hbm_to_vmem [thread:$0]  (!%p893_p0), %s887_s6, 256, %s889_s8, %s165_s10  }
  0x32   : > { %p1079_p1 = scmp.lt.s32.totalorder %s788_s17, 3  ;;  %p1080_p2 = scmp.ge.s32.totalorder %s788_s17, 1 }
  0x33   : > { %s508_s11 = sshll.u32 %s880_s28, 1  ;;  %s526_s18 = sshll.u32 %s784_s16, 5 }
  0x34   : > { %p929_p7 = pnand %p1080_p2, %p1079_p1  ;;  %s938_s22 = scalar_lea.hbm %s1069_s1, %s526_s18 }
  0x35   : > { %s189_s23 = scalar_lea.vmem [#allocation5], %s508_s11  ;;  %s186_s6 = scalar_lea.sflag [#allocation6], %s880_s28 }
  0x36   : > { %s1081_s7 = scalar_select %p929_p7, 1, 0 }
  0x37   : > { %s199_s29 = sshll.u32 %s189_s23, 4  ;;  %s640_s8 = scalar_lea.hbm %s938_s22, 32  ;;  %s200_s29 = int_to_ptr.vmem [resolvable:$true] %s199_s29 }
  0x38   : > { %p641_p9 = scmp.ne.s32.totalorder %s938_s22, %s640_s8  ;;  %s645_s4 = scalar_lea.hbm %s1069_s1, 64 }
  0x39   : > { %p646_p3 = scmp.lt.u32.totalorder %s938_s22, %s1069_s1  ;;  %p647_p6 = scmp.lt.u32.totalorder %s645_s4, %s640_s8 }
  0x3a   : > { %p643_p11 = pnand %p641_p9, %p612_p5  ;;  %p649_p10 = scmp.lt.u32.totalorder %s640_s8, %s938_s22 }
  0x3b   : > { %p648_p4 = por %p647_p6, %p646_p3 }
  0x3c   : > { %p644_p13 = pneg %p643_p11 }
  0x3d   : > { %p650_p12 = por %p649_p10, %p648_p4 }
  0x3f   : > { %p651_p1 = pnand %p650_p12, %p644_p13 }
  0x41   : > { %654 = shalt.err (!%p651_p1)
}
  0x42   : > { %s655_s28 = scalar_lea.vmem %s200_s29, 32  ;;  %s791_s11 = smov [#allocation5]  }
  0x43   : > { %p656_p2 = scmp.ne.s32.totalorder %s200_s29, %s655_s28  ;;  %s660_s19 = sshll.u32 %s791_s11, 4  ;;  %s661_s19 = int_to_ptr.vmem [resolvable:$false] %s660_s19 }
  0x44   : > { %s662_s21 = scalar_lea.vmem %s661_s19, 64  ;;  %p663_p8 = scmp.lt.s32.totalorder %s200_s29, %s661_s19 }
  0x45   : > { %p658_p9 = pnand %p656_p2, %p612_p5  ;;  %p664_p7 = scmp.lt.s32.totalorder %s662_s21, %s655_s28 }
  0x47   : > { %p659_p11 = pneg %p658_p9  ;;  %p665_p3 = por %p664_p7, %p663_p8 }
  0x49   : > { %p666_p6 = pnand %p665_p3, %p659_p11 }
  0x4b   : > { %669 = shalt.err (!%p666_p6)
}
  0x4c   : > { %545 = dma.hbm_to_vmem [thread:$0]  (!%p893_p0), %s938_s22, 32, %s200_s29, %s186_s6  }
  0x4d   : > { %p1082_p13 = scmp.ne.s32.totalorder %s1081_s7, 0 }
  0x4e   : > { %s963_s23 = sand.u32 (!%p1082_p13), 1, %s772_s13   ;;  %p1083_p8 = scmp.ne.s32.totalorder (!%p1082_p13), %s1075_s24, 0 }
  0x4f   : > { %208 = sbr.rel (%p1082_p13) target bundleno = 161 (0xa1), region = 28  ;;  %s512_s8 = sshll.u32 (!%p1082_p13), %s963_s23, 4 }
  0x50   : > { %s211_s10 = scalar_lea.sflag (!%p1082_p13), [#allocation3], %s963_s23  ;;  %s969_s30 = scalar_lea.vmem (!%p1082_p13), [#allocation2], %s512_s8 }
  0x56   : > { %751 = dma.done.wait (%p1083_p8), %s211_s10, 256  }
  0x57   : > { %753 = vsyncadd (%p1083_p8), %s211_s10, 4294967040  ;;  %s513_s9 = sshll.u32 %s963_s23, 1  ;;  %s220_s7 = scalar_lea.sflag [#allocation6], %s963_s23 }
  0x58   : > { %s223_s22 = scalar_lea.vmem [#allocation5], %s513_s9 }
  0x59   : > { %755 = dma.done.wait (%p1083_p8), %s220_s7, 32  }
  0x5a   : > { %757 = vsyncadd (%p1083_p8), %s220_s7, 4294967264  ;;  %v264_v0 = vlaneseq  ;;  %s255_s29 = scalar_lea.vmem [#allocation8], %s513_s9  ;;  %v792_v1 = vmov 0.0   ;;  %v271_v2 = vld [vmem:[%s223_s22] sm:$0x3]  ;;  %s528_s6 = sshll.u32 %s780_s15, 5 }
  0x5b   : > { %vm272_vm1 = vcmp.gt.f32.partialorder %v271_v2, 0.0  ;;  %s362_s4 = sshll.u32 %s255_s29, 4  ;;  %s985_s18 = scalar_lea.hbm %s1071_s3, %s528_s6  ;;  %s987_s4 = int_to_ptr.vmem [resolvable:$true] %s362_s4 }
  0x5c   : > { %vm266_vm0 = vcmp.lt.s32.totalorder %v264_v0, 256  ;;  %v275_v3 = vsel %vm272_vm1, %v271_v2, 1.0  ;;  %v516_v4 = vsel %vm272_vm1, 1.0, %v792_v1  ;;  %s334_s28 = scalar_lea.sflag [#allocation9], %s963_s23  ;;  %s670_s11 = scalar_lea.vmem %s987_s4, 32 }
  0x5d   : > { %268 = vst.msk [vmem:[%s255_s29] sm:$0x3] %vm266_vm0, %v792_v1  ;;  %604 = vlog2.f32 %v275_v3  ;;  %p671_p0 = scmp.ne.s32.totalorder %s987_s4, %s670_s11  ;;  %p1084_p5 = scmp.ne.s32.totalorder %s1076_s25, 0 }
  0x5e   : > { %s793_s19 = smov [#allocation8]  }
  0x5f   : > { %p672_p7 = pnand %p671_p0, %p1084_p5  ;;  %s674_s21 = sshll.u32 %s793_s19, 4  ;;  %s675_s21 = int_to_ptr.vmem [resolvable:$false] %s674_s21 }
  0x60   : > { %s676_s10 = scalar_lea.vmem %s675_s21, 64  ;;  %p677_p10 = scmp.lt.s32.totalorder %s987_s4, %s675_s21 }
  0x61   : > { %p673_p4 = pneg %p672_p7  ;;  %p678_p12 = scmp.lt.s32.totalorder %s676_s10, %s670_s11 }
  0x63   : > { %p679_p1 = por %p678_p12, %p677_p10 }
  0x64   : > { %v321_v5 = vld [vmem:[%s255_s29] sm:$0x3] }
  0x65   : > { %v322_v6 = vadd.f32 %v516_v4, %v321_v5  ;;  %p680_p2 = pnand %p679_p1, %p673_p4 }
  0x67   : > { %327 = vst.msk [vmem:[%s255_s29] sm:$0x3] %vm266_vm0, %v322_v6 }
  0x68   : > { %683 = shalt.err (!%p680_p2)
}
  0x69   : > { %s684_s9 = scalar_lea.hbm %s985_s18, 32  ;;  %s688_s29 = scalar_lea.hbm %s1071_s3, 64 }
  0x6a   : > { %p685_p9 = scmp.ne.s32.totalorder %s985_s18, %s684_s9  ;;  %p689_p6 = scmp.lt.u32.totalorder %s985_s18, %s1071_s3 }
  0x6b   : > { %p690_p13 = scmp.lt.u32.totalorder %s688_s29, %s684_s9  ;;  %p692_p0 = scmp.lt.u32.totalorder %s684_s9, %s985_s18 }
  0x6c   : > { %p686_p11 = pnand %p685_p9, %p1084_p5 }
  0x6d   : > { %p691_p8 = por %p690_p13, %p689_p6 }
  0x6e   : > { %p687_p3 = pneg %p686_p11 }
  0x6f   : > { %p693_p7 = por %p692_p0, %p691_p8 }
  0x71   : > { %p694_p4 = pnand %p693_p7, %p687_p3 }
  0x73   : > { %697 = shalt.err (!%p694_p4)
}
  0x74   : > { %536 = dma.vmem_to_hbm [thread:$0]  (%p1084_p5), %s987_s4, 32, %s985_s18, %s334_s28   ;;  %v605_v7 = vpop.eup %604  ;;  %v281_v9 = vshrl.u32 %v264_v0, 7  ;;  %v269_v12 = vld [vmem:[%s969_s30] sm:$0xff]  ;;  %v270_v14 = vld [vmem:[%s969_s30 + $0x8] sm:$0xff] }
  0x75   : > { %v277_v8 = vmul.f32 0.6931472, %v605_v7  ;;  %v292_v17 = vsub.f32 1.0, %v269_v12  ;;  %v293_v18 = vsub.f32 1.0, %v270_v14  ;;  %s527_s30 = sshll.u32 %s780_s15, 8  ;;  %s248_s4 = scalar_lea.vmem [#allocation7], %s512_s8 }
  0x76   : > { %v284_v13 = vsub.s32 0, %v281_v9  ;;  %v288_v15 = vsub.s32 1, %v281_v9  ;;  %s348_s24 = sshll.u32 %s248_s4, 4  ;;  %s1019_s11 = scalar_lea.hbm %s1070_s2, %s527_s30  ;;  %s1021_s24 = int_to_ptr.vmem [resolvable:$true] %s348_s24 }
  0x77   : > { %v278_v10 = vmul.f32 1.8256392, %v277_v8  ;;  %s329_s19 = scalar_lea.sflag [#allocation4], %s963_s23  ;;  %s698_s21 = scalar_lea.vmem %s1021_s24, 256 }
  0x78   : > { %v308_v25 = vrot.slane %v516_v4, %v284_v13  ;;  %v312_v27 = vrot.slane %v516_v4, %v288_v15  ;;  %p699_p10 = scmp.ne.s32.totalorder %s1021_s24, %s698_s21  ;;  %s794_s15 = smov [#allocation7]  }
  0x79   : > { %v529_v11 = vtrunc.f32 %v278_v10  ;;  %s702_s8 = sshll.u32 %s794_s15, 4  ;;  %s703_s8 = int_to_ptr.vmem [resolvable:$false] %s702_s8 }
  0x7a   : > { %p700_p12 = pnand %p699_p10, %p1084_p5  ;;  %s704_s10 = scalar_lea.vmem %s703_s8, 512 }
  0x7b   : > { %v530_v16 = vcvt.f32.s32 %v529_v11  ;;  %p705_p2 = scmp.lt.s32.totalorder %s1021_s24, %s703_s8  ;;  %p706_p9 = scmp.lt.s32.totalorder %s704_s10, %s698_s21 }
  0x7c   : > { %p701_p1 = pneg %p700_p12 }
  0x7d   : > { %v285_v19 = vrot.slane %v530_v16, %v284_v13  ;;  %v289_v20 = vrot.slane %v530_v16, %v288_v15  ;;  %p707_p11 = por %p706_p9, %p705_p2 }
  0x7f   : > { %vm290_vm2 = vcmp.lt.s32.totalorder %v281_v9, %v285_v19  ;;  %vm291_vm3 = vcmp.lt.s32.totalorder %v281_v9, %v289_v20  ;;  %p708_p3 = pnand %p707_p11, %p701_p1 }
  0x80   : > { %v294_v21 = vsel %vm290_vm2, %v269_v12, %v292_v17  ;;  %v295_v22 = vsel %vm291_vm3, %v270_v14, %v293_v18 }
  0x81   : > { %v296_v23 = vmax.f32 %v294_v21, 1e-08  ;;  %v297_v24 = vmax.f32 %v295_v22, 1e-08 }
  0x83   : > { %606 = vlog2.f32 %v296_v23 }
  0x84   : > { %608 = vlog2.f32 %v297_v24 }
  0x8d   : > { %v607_v26 = vpop.eup %606 }
  0x8e   : > { %v609_v28 = vpop.eup %608  ;;  %v299_v29 = vmul.f32 0.6931472, %v607_v26 }
  0x8f   : > { %v301_v30 = vmul.f32 0.6931472, %v609_v28 }
  0x90   : > { %v315_v31 = vmul.f32 %v308_v25, %v299_v29 }
  0x91   : > { %v316_v32 = vmul.f32 %v312_v27, %v301_v30 }
  0x92   : > { %319 = vst [vmem:[%s248_s4] sm:$0xff] %v315_v31 }
  0x93   : > { %320 = vst [vmem:[%s248_s4 + $0x8] sm:$0xff] %v316_v32 }
  0x94   : > { %711 = shalt.err (!%p708_p3)
}
  0x95   : > { %s712_s23 = scalar_lea.hbm %s1019_s11, 256  ;;  %s716_s22 = scalar_lea.hbm %s1070_s2, 512 }
  0x96   : > { %p713_p6 = scmp.ne.s32.totalorder %s1019_s11, %s712_s23  ;;  %p717_p0 = scmp.lt.u32.totalorder %s1019_s11, %s1070_s2 }
  0x97   : > { %p718_p7 = scmp.lt.u32.totalorder %s716_s22, %s712_s23  ;;  %p720_p10 = scmp.lt.u32.totalorder %s712_s23, %s1019_s11 }
  0x98   : > { %p714_p13 = pnand %p713_p6, %p1084_p5 }
  0x99   : > { %p719_p4 = por %p718_p7, %p717_p0 }
  0x9a   : > { %p715_p8 = pneg %p714_p13 }
  0x9b   : > { %p721_p12 = por %p720_p10, %p719_p4 }
  0x9d   : > { %p722_p1 = pnand %p721_p12, %p715_p8 }
  0x9f   : > { %725 = shalt.err (!%p722_p1)
}
  0xa0   : > { %535 = dma.vmem_to_hbm [thread:$0]  (%p1084_p5), %s1021_s24, 256, %s1019_s11, %s329_s19  }
  0xa1 PF: > { %s374_s5 = sand.u32 1, %s768_s12   ;;  %p1085_p2 = scmp.ne.s32.totalorder %s1077_s27, 0 }
  0xa2   : > { %p1086_p9 = scmp.ge.s32.totalorder %s788_s17, 2  ;;  %s375_s30 = scalar_lea.sflag [#allocation4], %s374_s5 }
  0xa4   : > { %p547_p11 = pnand %p1086_p9, %p1085_p2 }
  0xa6   : > { %759 = dma.done.wait (!%p547_p11), %s375_s30, 256  }
  0xa7   : > { %761 = vsyncadd (!%p547_p11), %s375_s30, 4294967040  ;;  %s384_s4 = scalar_lea.sflag [#allocation9], %s374_s5 }
  0xa8   : > { %763 = dma.done.wait (!%p547_p11), %s384_s4, 32  }
  0xa9   : > { %765 = vsyncadd (!%p547_p11), %s384_s4, 4294967264  ;;  %s26_s17 = sadd.s32 1, %s788_s17   ;;  %s1087_s12 = smov %s772_s13 }
  0xaa   : > { %p23_p3 = scmp.ge.s32.totalorder %s26_s17, 4   ;;  %s1088_s13 = smov %s776_s14 }
  0xab   : > { %s1089_s14 = smov %s871_s26  ;;  %s1090_s15 = smov %s784_s16 }
  0xac   : > { %s1091_s16 = smov %s1093_s20  ;;  %25 = sbr.rel (!%p23_p3) target bundleno = 10 (0xa), region = 107 }
  0xb3   :  { %389 = vsyncpa [#allocation3], 1 }
  0xb4   :  { %391 = vsyncpa [#allocation3 + $0x1], 1 }
  0xb5   :  { %392 = vsyncpa [#allocation6], 1 }
  0xb6   :  { %394 = vsyncpa [#allocation6 + $0x1], 1 }
  0xb7   :  { %395 = vsyncpa [#allocation4], 1 }
  0xb8   :  { %397 = vsyncpa [#allocation4 + $0x1], 1 }
  0xb9   :  { %398 = vsyncpa [#allocation9], 1 }
  0xba   :  { %400 = vsyncpa [#allocation9 + $0x1], 1 }

</bundles_post_ra>
